<compile_context>
chip_gen: v5e
topology: v5e:2x2
jax: 0.10.0
libtpu: 0.0.40
codegen_flags: <defaults>
</compile_context>

<pallas_src>
import functools

import jax
import jax.numpy as jnp
from jax.experimental import pallas as pl
from jax.experimental.pallas import tpu as pltpu


def _round_up(x, m):
    return ((x + m - 1) // m) * m


def _slab_rows(o_pad, E, Hd, De):
    """Row offsets of each weight section inside the packed weight slab."""
    e0 = 0
    ah0 = e0 + o_pad              # attention W_h
    ae0 = ah0 + Hd                # attention W_e
    gi0 = ae0 + De                # GRU input gates  (r|z|n fused)
    gh0 = gi0 + E + De            # GRU hidden gates (r|z|n fused)
    fc0 = gh0 + Hd                # fc_out
    end = fc0 + Hd + E + De
    return e0, ah0, ae0, gi0, gh0, fc0, end


def decoder_kernel(x_ref, hid_ref, enc_ref, w_ref, vec_ref, *rest,
                   has_h0, B_pad, S, o_pad, E, Hd, De):
    if has_h0:
        h0_ref, out_ref = rest
    else:
        (out_ref,) = rest

    f32 = jnp.float32
    e0, ah0, ae0, gi0, gh0, fc0, _ = _slab_rows(o_pad, E, Hd, De)
    lanes = out_ref.shape[-1]

    x = x_ref[...]              # [B_pad, o_pad]   (zero-padded input one-hot/logits)
    hid = hid_ref[...]          # [B_pad, Hd]
    enc2d = enc_ref[...]        # [B_pad*S, De]
    vecs = vec_ref[...]         # [8, lanes]       bias / vector slab

    def mm(a, r0, r1):          # activations @ pre-transposed weight section
        return jnp.dot(a, w_ref[r0:r1, :], preferred_element_type=f32)

    # ---- embedding + dropout(eval) + LayerNorm (padded lanes stay zero) ----
    emb_w = mm(x, e0, e0 + o_pad) + vecs[0:1, :]                     # [B_pad, lanes]
    mu = jnp.sum(emb_w, axis=-1, keepdims=True) * (1.0 / E)
    var = jnp.sum(emb_w * emb_w, axis=-1, keepdims=True) * (1.0 / E) - mu * mu
    emb_w = (emb_w - mu) * jax.lax.rsqrt(var + 1e-5) * vecs[1:2, :] + vecs[2:3, :]
    emb = emb_w[:, :E]                                               # [B_pad, E]

    # ---- Bahdanau attention: softmax_S( v . tanh(W_h h + W_e enc + b) ) ----
    e_h = mm(hid, ah0, ah0 + Hd)                                     # [B_pad, lanes]
    e_e = mm(enc2d, ae0, ae0 + De)                                   # [B_pad*S, lanes]
    energy = jnp.tanh(e_e.reshape(B_pad, S, lanes)
                      + e_h[:, None, :] + vecs[3:4, :][None])
    # v-matvec as VPU multiply + lane reduce (avoids an N=1 MXU matmul).
    scores = jnp.sum(energy * vecs[4:5, :][None], axis=-1)           # [B_pad, S]
    scores = scores - jnp.max(scores, axis=-1, keepdims=True)
    p = jnp.exp(scores)
    a = p * pl.reciprocal(jnp.sum(p, axis=-1, keepdims=True), approx=True)

    # ---- weighted context = bmm(a.unsqueeze(1), enc).squeeze(1) ----
    weighted = jnp.sum(a[:, :, None] * enc2d.reshape(B_pad, S, De), axis=1)

    # ---- fused single-step GRU cell on rnn_input = cat(embedded, weighted) --
    ew = jnp.concatenate([emb, weighted], axis=-1)                   # [B_pad, E+De]
    pre_i = mm(ew, gi0, gi0 + E + De) + vecs[5:6, :]                 # gates r|z|n
    if has_h0:
        h0 = h0_ref[...]
        pre_h = mm(h0, gh0, gh0 + Hd) + vecs[6:7, :]
    else:
        pre_h = vecs[6:7, :]          # h0 == 0  =>  W_hh @ h0 vanishes
    r = jax.nn.sigmoid(pre_i[:, 0:Hd] + pre_h[:, 0:Hd])
    z = jax.nn.sigmoid(pre_i[:, Hd:2 * Hd] + pre_h[:, Hd:2 * Hd])
    n = jnp.tanh(pre_i[:, 2 * Hd:3 * Hd] + r * pre_h[:, 2 * Hd:3 * Hd])
    h_new = (1.0 - z) * n + (z * h0 if has_h0 else 0.0)              # [B_pad, Hd]

    # ---- fc_out on cat(output, embedded, weighted) -> one fused matmul ----
    fc_in = jnp.concatenate([h_new, ew], axis=-1)                    # [B_pad, Hd+E+De]
    pred = mm(fc_in, fc0, fc0 + Hd + E + De) + vecs[7:8, :]          # [B_pad, lanes]

    # single lane-dense store: [ pred (lanes-Hd) | h_new (Hd) ]
    out_ref[...] = jnp.concatenate([pred[:, :lanes - Hd], h_new], axis=-1)


def pack_params(params):
    """Pre-transpose ([in,out]) + pack all weights/biases into two VMEM slabs."""
    (w_emb, b_emb, ln_w, ln_b, wa_h, wa_e, b_a, v,
     w_ih, w_hh, b_ih, b_hh, w_fc, b_fc) = params
    E, O = w_emb.shape
    Ha, De = wa_e.shape
    Hd = w_hh.shape[1]
    o_pad = _round_up(O, 8)
    lanes = _round_up(max(E, Ha, 3 * Hd, O + Hd), 128)

    def padc(w, rows):
        out = jnp.zeros((rows, lanes), jnp.float32)
        return out.at[:w.shape[0], :w.shape[1]].set(w.astype(jnp.float32))

    def row(x):
        out = jnp.zeros((1, lanes), jnp.float32)
        return out.at[0, :x.shape[0]].set(x.astype(jnp.float32))

    # fc weight columns reordered from (output, weighted, embedded) to
    # (output, embedded, weighted) so the kernel reuses cat(emb, weighted).
    w_fc_r = jnp.concatenate(
        [w_fc[:, :Hd], w_fc[:, Hd + De:], w_fc[:, Hd:Hd + De]], axis=1)

    w_slab = jnp.concatenate([
        padc(w_emb.T, o_pad),          # embedding            [O, E]
        padc(wa_h.T, Hd),              # attention (hidden)   [Hd, Ha]
        padc(wa_e.T, De),              # attention (encoder)  [De, Ha]
        padc(w_ih.T, E + De),          # GRU input  gates     [E+De, 3Hd]
        padc(w_hh.T, Hd),              # GRU hidden gates     [Hd, 3Hd]
        padc(w_fc_r.T, Hd + E + De),   # fc_out               [Hd+E+De, O]
    ], axis=0)

    vec_slab = jnp.concatenate([
        row(b_emb), row(ln_w), row(ln_b), row(b_a), row(v),
        row(b_ih), row(b_hh), row(b_fc)], axis=0)          # [8, lanes]

    return dict(w=w_slab, vec=vec_slab,
                O=O, o_pad=o_pad, E=E, Hd=Hd, De=De, lanes=lanes)


def decoder_forward(packed, inp, hidden, encoder_outputs, dec_hid=None):
    B, S, De = encoder_outputs.shape
    O, o_pad, E, Hd, lanes = (packed["O"], packed["o_pad"], packed["E"],
                              packed["Hd"], packed["lanes"])
    assert De == packed["De"]
    B_pad = max(_round_up(B, 8), 8)

    x_pad = jnp.zeros((B_pad, o_pad), jnp.float32).at[:B, :O].set(inp)
    hid_pad = jnp.zeros((B_pad, Hd), jnp.float32).at[:B, :].set(hidden)
    enc_pad = jnp.zeros((B_pad, S, De), jnp.float32).at[:B].set(encoder_outputs)
    enc2d = enc_pad.reshape(B_pad * S, De)

    has_h0 = dec_hid is not None
    args = [x_pad, hid_pad, enc2d, packed["w"], packed["vec"]]
    if has_h0:
        h0_pad = jnp.zeros((B_pad, Hd), jnp.float32).at[:B, :].set(
            dec_hid.reshape(B, Hd))
        args.append(h0_pad)

    vmem = pl.BlockSpec(memory_space=pltpu.MemorySpace.VMEM)
    kernel = functools.partial(
        decoder_kernel, has_h0=has_h0, B_pad=B_pad, S=S,
        o_pad=o_pad, E=E, Hd=Hd, De=De)

    out = pl.pallas_call(
        kernel,
        out_shape=jax.ShapeDtypeStruct((B_pad, lanes), jnp.float32),
        in_specs=[vmem] * len(args),
        out_specs=vmem,
    )(*args)

    pred = out[:B, :O]
    h_new = out[:B, lanes - Hd:]
    return pred, h_new[None]          # dec_hid: [num_layer=1, B, Hd]


def init_params(key, output_dim, emb_dim, enc_hid_dim, dec_hid_dim):
    De = 2 * enc_hid_dim
    E, Hd, O, Ha = emb_dim, dec_hid_dim, output_dim, dec_hid_dim
    ks = iter(jax.random.split(key, 12))

    def m(shape, scale=0.1):
        return (scale * jax.random.normal(next(ks), shape)).astype(jnp.float32)

    return [
        m((E, O)), m((E,)),                                         # embedding W, b
        jnp.ones((E,), jnp.float32), jnp.zeros((E,), jnp.float32),  # LayerNorm w, b
        m((Ha, Hd)), m((Ha, De)), m((Ha,)), m((Ha,)),               # attention W_h, W_e, b, v
        m((3 * Hd, E + De)), m((3 * Hd, Hd)),                       # GRU W_ih, W_hh (r|z|n)
        m((3 * Hd,)), m((3 * Hd,)),                                 # GRU b_ih, b_hh
        m((O, Hd + De + E)), m((O,)),                               # fc_out (out|wtd|emb), b
    ]


def reference_forward(params, inp, hidden, enc, dec_hid=None):
    (w_emb, b_emb, ln_w, ln_b, wa_h, wa_e, b_a, v,
     w_ih, w_hh, b_ih, b_hh, w_fc, b_fc) = params
    B, S, De = enc.shape
    Hd = w_hh.shape[1]
    emb = inp @ w_emb.T + b_emb
    mu = emb.mean(-1, keepdims=True)
    var = ((emb - mu) ** 2).mean(-1, keepdims=True)
    emb = (emb - mu) / jnp.sqrt(var + 1e-5) * ln_w + ln_b
    energy = jnp.tanh(enc @ wa_e.T + (hidden @ wa_h.T)[:, None, :] + b_a)
    a = jax.nn.softmax(jnp.einsum("bsh,h->bs", energy, v), axis=1)
    weighted = jnp.einsum("bs,bsd->bd", a, enc)
    h0 = (jnp.zeros((B, Hd), jnp.float32) if dec_hid is None
          else dec_hid.reshape(B, Hd))
    gi = jnp.concatenate([emb, weighted], axis=-1) @ w_ih.T + b_ih
    gh = h0 @ w_hh.T + b_hh
    i_r, i_z, i_n = jnp.split(gi, 3, axis=-1)
    h_r, h_z, h_n = jnp.split(gh, 3, axis=-1)
    r = jax.nn.sigmoid(i_r + h_r)
    z = jax.nn.sigmoid(i_z + h_z)
    n = jnp.tanh(i_n + r * h_n)
    h_new = (1.0 - z) * n + z * h0
    pred = jnp.concatenate([h_new, weighted, emb], axis=-1) @ w_fc.T + b_fc
    return pred, h_new[None]


if __name__ == "__main__":
    B, S = 4, 8
    output_dim, emb_dim, enc_hid_dim, dec_hid_dim = 10, 32, 32, 32

    key = jax.random.PRNGKey(0)
    k1, k2, k3, k4, kp = jax.random.split(key, 5)
    inp = jax.random.normal(k1, (B, output_dim), jnp.float32)
    hidden = jax.random.normal(k2, (B, dec_hid_dim), jnp.float32)
    enc_out = jax.random.normal(k3, (B, S, 2 * enc_hid_dim), jnp.float32)
    dec_hid_in = 0.1 * jax.random.normal(k4, (1, B, dec_hid_dim), jnp.float32)

    params = init_params(kp, output_dim, emb_dim, enc_hid_dim, dec_hid_dim)
    packed = pack_params(params)

    # dec_hid=None path (PyTorch GRU default: zero initial hidden; specialized)
    pred, dec_hid = decoder_forward(packed, inp, hidden, enc_out, dec_hid=None)
    jax.block_until_ready((pred, dec_hid))
    assert pred.shape == (B, output_dim)
    assert dec_hid.shape == (1, B, dec_hid_dim)
    pred_r, hid_r = reference_forward(params, inp, hidden, enc_out, None)
    assert jnp.allclose(pred, pred_r, atol=2e-3, rtol=2e-3)
    assert jnp.allclose(dec_hid, hid_r, atol=2e-3, rtol=2e-3)

    # explicit dec_hid path (general GRU cell with provided initial hidden)
    pred2, dec_hid2 = decoder_forward(packed, inp, hidden, enc_out, dec_hid_in)
    jax.block_until_ready((pred2, dec_hid2))
    pred2_r, hid2_r = reference_forward(params, inp, hidden, enc_out, dec_hid_in)
    assert jnp.allclose(pred2, pred2_r, atol=2e-3, rtol=2e-3)
    assert jnp.allclose(dec_hid2, hid2_r, atol=2e-3, rtol=2e-3)

    print("KERNEL_OK")
</pallas_src>

<mosaic_0001>
module attributes {stable_mosaic.version = 11 : i64} {
  func.func @decoder_kernel(%arg0: memref<8x16xf32, #tpu.memory_space<vmem>>, %arg1: memref<8x32xf32, #tpu.memory_space<vmem>>, %arg2: memref<64x64xf32, #tpu.memory_space<vmem>>, %arg3: memref<368x128xf32, #tpu.memory_space<vmem>>, %arg4: memref<8x128xf32, #tpu.memory_space<vmem>>, %arg5: memref<8x128xf32, #tpu.memory_space<vmem>>) attributes {dimension_semantics = [], scalar_prefetch = 0 : i64, scratch_operands = 0 : i64, tpu.core_type = #tpu.core_type<tc>} {
    %c0 = arith.constant 0 : index
    %c0_0 = arith.constant 0 : index
    %0 = vector.load %arg0[%c0, %c0_0] : memref<8x16xf32, #tpu.memory_space<vmem>>, vector<8x16xf32>
    %c0_1 = arith.constant 0 : index
    %c0_2 = arith.constant 0 : index
    %1 = vector.load %arg1[%c0_1, %c0_2] : memref<8x32xf32, #tpu.memory_space<vmem>>, vector<8x32xf32>
    %c0_3 = arith.constant 0 : index
    %c0_4 = arith.constant 0 : index
    %2 = vector.load %arg2[%c0_3, %c0_4] : memref<64x64xf32, #tpu.memory_space<vmem>>, vector<64x64xf32>
    %c0_5 = arith.constant 0 : index
    %c0_6 = arith.constant 0 : index
    %3 = vector.load %arg4[%c0_5, %c0_6] : memref<8x128xf32, #tpu.memory_space<vmem>>, vector<8x128xf32>
    %c0_7 = arith.constant 0 : index
    %c0_8 = arith.constant 0 : index
    %4 = vector.load %arg3[%c0_7, %c0_8] : memref<368x128xf32, #tpu.memory_space<vmem>>, vector<16x128xf32>
    %cst = arith.constant dense<0.000000e+00> : vector<8x128xf32>
    %5 = tpu.matmul %0, %4, %cst {dimension_numbers = #tpu.dot_dimension_numbers<[1], [0], [0], [1], [0, 0, 1, 1], [], []>} : vector<8x16xf32>, vector<16x128xf32>, vector<8x128xf32> -> vector<8x128xf32>
    %6 = vector.extract_strided_slice %3 {offsets = [0, 0], sizes = [1, 128], strides = [1, 1]} : vector<8x128xf32> to vector<1x128xf32>
    %7 = vector.broadcast %6 : vector<1x128xf32> to vector<8x128xf32>
    %8 = arith.addf %5, %7 : vector<8x128xf32>
    %cst_9 = arith.constant dense<0.000000e+00> : vector<8xf32>
    %9 = vector.multi_reduction <add>, %8, %cst_9 [1] : vector<8x128xf32> to vector<8xf32>
    %10 = vector.shape_cast %9 : vector<8xf32> to vector<8x1xf32>
    %cst_10 = arith.constant 3.125000e-02 : f32
    %11 = vector.broadcast %cst_10 : f32 to vector<8x1xf32>
    %12 = arith.mulf %10, %11 : vector<8x1xf32>
    %13 = arith.mulf %8, %8 : vector<8x128xf32>
    %cst_11 = arith.constant dense<0.000000e+00> : vector<8xf32>
    %14 = vector.multi_reduction <add>, %13, %cst_11 [1] : vector<8x128xf32> to vector<8xf32>
    %15 = vector.shape_cast %14 : vector<8xf32> to vector<8x1xf32>
    %cst_12 = arith.constant 3.125000e-02 : f32
    %16 = vector.broadcast %cst_12 : f32 to vector<8x1xf32>
    %17 = arith.mulf %15, %16 : vector<8x1xf32>
    %18 = arith.mulf %12, %12 : vector<8x1xf32>
    %19 = arith.subf %17, %18 : vector<8x1xf32>
    %20 = vector.broadcast %12 : vector<8x1xf32> to vector<8x128xf32>
    %21 = arith.subf %8, %20 : vector<8x128xf32>
    %cst_13 = arith.constant 9.99999974E-6 : f32
    %22 = vector.broadcast %cst_13 : f32 to vector<8x1xf32>
    %23 = arith.addf %19, %22 : vector<8x1xf32>
    %24 = math.rsqrt %23 : vector<8x1xf32>
    %25 = vector.broadcast %24 : vector<8x1xf32> to vector<8x128xf32>
    %26 = arith.mulf %21, %25 : vector<8x128xf32>
    %27 = vector.extract_strided_slice %3 {offsets = [1, 0], sizes = [1, 128], strides = [1, 1]} : vector<8x128xf32> to vector<1x128xf32>
    %28 = vector.broadcast %27 : vector<1x128xf32> to vector<8x128xf32>
    %29 = arith.mulf %26, %28 : vector<8x128xf32>
    %30 = vector.extract_strided_slice %3 {offsets = [2, 0], sizes = [1, 128], strides = [1, 1]} : vector<8x128xf32> to vector<1x128xf32>
    %31 = vector.broadcast %30 : vector<1x128xf32> to vector<8x128xf32>
    %32 = arith.addf %29, %31 : vector<8x128xf32>
    %33 = vector.extract_strided_slice %32 {offsets = [0, 0], sizes = [8, 32], strides = [1, 1]} : vector<8x128xf32> to vector<8x32xf32>
    %c16 = arith.constant 16 : index
    %c0_14 = arith.constant 0 : index
    %34 = vector.load %arg3[%c16, %c0_14] : memref<368x128xf32, #tpu.memory_space<vmem>>, vector<32x128xf32>
    %cst_15 = arith.constant dense<0.000000e+00> : vector<8x128xf32>
    %35 = tpu.matmul %1, %34, %cst_15 {dimension_numbers = #tpu.dot_dimension_numbers<[1], [0], [0], [1], [0, 0, 1, 1], [], []>} : vector<8x32xf32>, vector<32x128xf32>, vector<8x128xf32> -> vector<8x128xf32>
    %c48 = arith.constant 48 : index
    %c0_16 = arith.constant 0 : index
    %36 = vector.load %arg3[%c48, %c0_16] : memref<368x128xf32, #tpu.memory_space<vmem>>, vector<64x128xf32>
    %cst_17 = arith.constant dense<0.000000e+00> : vector<64x128xf32>
    %37 = tpu.matmul %2, %36, %cst_17 {dimension_numbers = #tpu.dot_dimension_numbers<[1], [0], [0], [1], [0, 0, 1, 1], [], []>} : vector<64x64xf32>, vector<64x128xf32>, vector<64x128xf32> -> vector<64x128xf32>
    %38 = vector.shape_cast %37 : vector<64x128xf32> to vector<8x8x128xf32>
    %39 = vector.shape_cast %35 : vector<8x128xf32> to vector<8x1x128xf32>
    %40 = vector.broadcast %39 : vector<8x1x128xf32> to vector<8x8x128xf32>
    %41 = arith.addf %38, %40 : vector<8x8x128xf32>
    %42 = vector.extract_strided_slice %3 {offsets = [3, 0], sizes = [1, 128], strides = [1, 1]} : vector<8x128xf32> to vector<1x128xf32>
    %43 = vector.shape_cast %42 : vector<1x128xf32> to vector<1x1x128xf32>
    %44 = vector.broadcast %43 : vector<1x1x128xf32> to vector<8x8x128xf32>
    %45 = arith.addf %41, %44 : vector<8x8x128xf32>
    %46 = math.tanh %45 : vector<8x8x128xf32>
    %47 = vector.extract_strided_slice %3 {offsets = [4, 0], sizes = [1, 128], strides = [1, 1]} : vector<8x128xf32> to vector<1x128xf32>
    %48 = vector.shape_cast %47 : vector<1x128xf32> to vector<1x1x128xf32>
    %49 = vector.broadcast %48 : vector<1x1x128xf32> to vector<8x8x128xf32>
    %50 = arith.mulf %46, %49 : vector<8x8x128xf32>
    %cst_18 = arith.constant dense<0.000000e+00> : vector<8x8xf32>
    %51 = vector.multi_reduction <add>, %50, %cst_18 [2] : vector<8x8x128xf32> to vector<8x8xf32>
    %cst_19 = arith.constant dense<0xFF800000> : vector<8xf32>
    %52 = vector.multi_reduction <maximumf>, %51, %cst_19 [1] : vector<8x8xf32> to vector<8xf32>
    %53 = vector.shape_cast %52 : vector<8xf32> to vector<8x1xf32>
    %54 = vector.broadcast %53 : vector<8x1xf32> to vector<8x8xf32>
    %55 = arith.subf %51, %54 : vector<8x8xf32>
    %56 = math.exp %55 : vector<8x8xf32>
    %cst_20 = arith.constant dense<0.000000e+00> : vector<8xf32>
    %57 = vector.multi_reduction <add>, %56, %cst_20 [1] : vector<8x8xf32> to vector<8xf32>
    %58 = vector.shape_cast %57 : vector<8xf32> to vector<8x1xf32>
    %59 = tpu.reciprocal %58 {approx = true} : vector<8x1xf32> -> vector<8x1xf32>
    %60 = vector.broadcast %59 : vector<8x1xf32> to vector<8x8xf32>
    %61 = arith.mulf %56, %60 : vector<8x8xf32>
    %62 = vector.shape_cast %61 : vector<8x8xf32> to vector<8x8x1xf32>
    %63 = vector.shape_cast %2 : vector<64x64xf32> to vector<8x8x64xf32>
    %64 = vector.broadcast %62 : vector<8x8x1xf32> to vector<8x8x64xf32>
    %65 = arith.mulf %64, %63 : vector<8x8x64xf32>
    %cst_21 = arith.constant dense<0.000000e+00> : vector<8x64xf32>
    %66 = vector.multi_reduction <add>, %65, %cst_21 [1] : vector<8x8x64xf32> to vector<8x64xf32>
    %67 = tpu.concatenate %33, %66 in 1 : vector<8x32xf32>, vector<8x64xf32> -> vector<8x96xf32>
    %c112 = arith.constant 112 : index
    %c0_22 = arith.constant 0 : index
    %68 = vector.load %arg3[%c112, %c0_22] : memref<368x128xf32, #tpu.memory_space<vmem>>, vector<96x128xf32>
    %cst_23 = arith.constant dense<0.000000e+00> : vector<8x128xf32>
    %69 = tpu.matmul %67, %68, %cst_23 {dimension_numbers = #tpu.dot_dimension_numbers<[1], [0], [0], [1], [0, 0, 1, 1], [], []>} : vector<8x96xf32>, vector<96x128xf32>, vector<8x128xf32> -> vector<8x128xf32>
    %70 = vector.extract_strided_slice %3 {offsets = [5, 0], sizes = [1, 128], strides = [1, 1]} : vector<8x128xf32> to vector<1x128xf32>
    %71 = vector.broadcast %70 : vector<1x128xf32> to vector<8x128xf32>
    %72 = arith.addf %69, %71 : vector<8x128xf32>
    %73 = vector.extract_strided_slice %3 {offsets = [6, 0], sizes = [1, 128], strides = [1, 1]} : vector<8x128xf32> to vector<1x128xf32>
    %74 = vector.extract_strided_slice %72 {offsets = [0, 0], sizes = [8, 32], strides = [1, 1]} : vector<8x128xf32> to vector<8x32xf32>
    %75 = vector.extract_strided_slice %73 {offsets = [0, 0], sizes = [1, 32], strides = [1, 1]} : vector<1x128xf32> to vector<1x32xf32>
    %76 = vector.broadcast %75 : vector<1x32xf32> to vector<8x32xf32>
    %77 = arith.addf %74, %76 : vector<8x32xf32>
    %78 = arith.negf %77 : vector<8x32xf32>
    %79 = math.exp %78 : vector<8x32xf32>
    %cst_24 = arith.constant 1.000000e+00 : f32
    %80 = vector.broadcast %cst_24 : f32 to vector<8x32xf32>
    %81 = arith.addf %80, %79 : vector<8x32xf32>
    %82 = arith.divf %80, %81 : vector<8x32xf32>
    %83 = vector.extract_strided_slice %72 {offsets = [0, 32], sizes = [8, 32], strides = [1, 1]} : vector<8x128xf32> to vector<8x32xf32>
    %84 = vector.extract_strided_slice %73 {offsets = [0, 32], sizes = [1, 32], strides = [1, 1]} : vector<1x128xf32> to vector<1x32xf32>
    %85 = vector.broadcast %84 : vector<1x32xf32> to vector<8x32xf32>
    %86 = arith.addf %83, %85 : vector<8x32xf32>
    %87 = arith.negf %86 : vector<8x32xf32>
    %88 = math.exp %87 : vector<8x32xf32>
    %cst_25 = arith.constant 1.000000e+00 : f32
    %89 = vector.broadcast %cst_25 : f32 to vector<8x32xf32>
    %90 = arith.addf %89, %88 : vector<8x32xf32>
    %91 = arith.divf %89, %90 : vector<8x32xf32>
    %92 = vector.extract_strided_slice %72 {offsets = [0, 64], sizes = [8, 32], strides = [1, 1]} : vector<8x128xf32> to vector<8x32xf32>
    %93 = vector.extract_strided_slice %73 {offsets = [0, 64], sizes = [1, 32], strides = [1, 1]} : vector<1x128xf32> to vector<1x32xf32>
    %94 = vector.broadcast %93 : vector<1x32xf32> to vector<8x32xf32>
    %95 = arith.mulf %82, %94 : vector<8x32xf32>
    %96 = arith.addf %92, %95 : vector<8x32xf32>
    %97 = math.tanh %96 : vector<8x32xf32>
    %cst_26 = arith.constant 1.000000e+00 : f32
    %98 = vector.broadcast %cst_26 : f32 to vector<8x32xf32>
    %99 = arith.subf %98, %91 : vector<8x32xf32>
    %100 = arith.mulf %99, %97 : vector<8x32xf32>
    %cst_27 = arith.constant 0.000000e+00 : f32
    %101 = vector.broadcast %cst_27 : f32 to vector<8x32xf32>
    %102 = arith.addf %100, %101 : vector<8x32xf32>
    %103 = tpu.concatenate %102, %67 in 1 : vector<8x32xf32>, vector<8x96xf32> -> vector<8x128xf32>
    %c240 = arith.constant 240 : index
    %c0_28 = arith.constant 0 : index
    %104 = vector.load %arg3[%c240, %c0_28] : memref<368x128xf32, #tpu.memory_space<vmem>>, vector<128x128xf32>
    %cst_29 = arith.constant dense<0.000000e+00> : vector<8x128xf32>
    %105 = tpu.matmul %103, %104, %cst_29 {dimension_numbers = #tpu.dot_dimension_numbers<[1], [0], [0], [1], [0, 0, 1, 1], [], []>} : vector<8x128xf32>, vector<128x128xf32>, vector<8x128xf32> -> vector<8x128xf32>
    %106 = vector.extract_strided_slice %3 {offsets = [7, 0], sizes = [1, 128], strides = [1, 1]} : vector<8x128xf32> to vector<1x128xf32>
    %107 = vector.broadcast %106 : vector<1x128xf32> to vector<8x128xf32>
    %108 = arith.addf %105, %107 : vector<8x128xf32>
    %109 = vector.extract_strided_slice %108 {offsets = [0, 0], sizes = [8, 96], strides = [1, 1]} : vector<8x128xf32> to vector<8x96xf32>
    %110 = tpu.concatenate %109, %102 in 1 : vector<8x96xf32>, vector<8x32xf32> -> vector<8x128xf32>
    %c0_30 = arith.constant 0 : index
    %c0_31 = arith.constant 0 : index
    %111 = vector.load %arg5[%c0_30, %c0_31] : memref<8x128xf32, #tpu.memory_space<vmem>>, vector<8x128xf32>
    tpu.vector_store %arg5[%c0_30, %c0_31], %110 {strides = array<i32>} : memref<8x128xf32, #tpu.memory_space<vmem>>, vector<8x128xf32>,
    return
  }
}

</mosaic_0001>

<bundles_post_ra>
// kernel: tpu_custom_call.1
= control target key start
LH: loop header
LB: loop body
LE: loop exit
PB: predicated region body
PF: predicated region fallthrough
CT: control target
= control target key end

     0   :  { %10 = vsyncpa [#allocation3], 0  ;;  %s1168_s0 = inlined_call_operand.hbm [shape: f32[8,16], index: 0, kind: input, shape index: {}]   ;;  %s1169_s1 = inlined_call_operand.hbm [shape: f32[8,32], index: 1, kind: input, shape index: {}]   ;;  %s1170_s2 = inlined_call_operand.hbm [shape: f32[64,64], index: 2, kind: input, shape index: {}]   ;;  %s1171_s3 = inlined_call_operand.hbm [shape: f32[368,128], index: 3, kind: input, shape index: {}]   ;;  %s1172_s4 = inlined_call_operand.hbm [shape: f32[8,128], index: 4, kind: input, shape index: {}]   ;;  %s1173_s5 = inlined_call_operand.hbm [shape: f32[8,128], index: 5, kind: output, shape index: {}]  }
   0x1   :  { %11 = vsyncpa [#allocation6], 0 }
   0x2   :  { %12 = vsyncpa [#allocation9], 0  ;;  %s30_s20 = sshll.u32 %s1169_s1, 4  ;;  %s31_s20 = int_to_ptr.hbm [resolvable:$true] %s30_s20 }
   0x3   :  { %13 = vsyncpa [#allocation4], 0  ;;  %s985_s21 = smov [#allocation5]   ;;  %s53_s25 = sshll.u32 %s1171_s3, 4  ;;  %s54_s25 = int_to_ptr.hbm [resolvable:$true] %s53_s25 }
   0x4   :  { %s32_s22 = sshll.u32 %s985_s21, 4  ;;  %s986_s26 = smov [#allocation8]   ;;  %s33_s22 = int_to_ptr.vmem [resolvable:$true] %s32_s22 }
   0x5   :  { %35 = dma.hbm_to_vmem [thread:$0]  %s31_s20, 128, %s33_s22, [#allocation6]  }
   0x6   :  { %s55_s27 = sshll.u32 %s986_s26, 4  ;;  %s19_s30 = sshll.u32 %s1168_s0, 4  ;;  %s56_s27 = int_to_ptr.vmem [resolvable:$true] %s55_s27  ;;  %s20_s30 = int_to_ptr.hbm [resolvable:$true] %s19_s30 }
   0x7   :  { %s987_s1 = smov 128   ;;  %s988_s6 = smov 8  }
   0x8   :  { %61 = dma.hbm_to_vmem [thread:$0]  %s54_s25, 5888, %s56_s27, [#allocation9], %s987_s1, %s987_s1, %s988_s6  }
   0x9   :  { %s40_s9 = sshll.u32 %s1170_s2, 4  ;;  %s989_s10 = smov [#allocation2]   ;;  %s41_s9 = int_to_ptr.hbm [resolvable:$true] %s40_s9 }
   0xa   :  { %s21_s11 = sshll.u32 %s989_s10, 4  ;;  %s990_s3 = smov [#allocation7]   ;;  %s22_s11 = int_to_ptr.vmem [resolvable:$true] %s21_s11 }
   0xb   :  { %24 = dma.hbm_to_vmem [thread:$0]  %s20_s30, 128, %s22_s11, [#allocation3]  }
   0xc   :  { %s42_s12 = sshll.u32 %s990_s3, 4  ;;  %s67_s0 = sshll.u32 %s1172_s4, 4  ;;  %s43_s12 = int_to_ptr.vmem [resolvable:$true] %s42_s12  ;;  %s68_s0 = int_to_ptr.hbm [resolvable:$true] %s67_s0 }
   0xd   :  { %48 = dma.hbm_to_vmem [thread:$0]  %s41_s9, 1024, %s43_s12, [#allocation6], %s987_s1, %s987_s1, %s988_s6  }
   0xe   :  { %s991_s15 = smov [#allocation10]  }
   0xf   :  { %s69_s16 = sshll.u32 %s991_s15, 4  ;;  %s70_s16 = int_to_ptr.vmem [resolvable:$true] %s69_s16 }
  0x10   :  { %72 = dma.hbm_to_vmem [thread:$0]  %s68_s0, 128, %s70_s16, [#allocation9]  }
  0x11   :  { %977 = dma.done.wait [#allocation3], 128  }
  0x12   :  { %978 = vsyncadd [#allocation3], 4294967168 }
  0x13   :  { %979 = dma.done.wait [#allocation6], 1152  }
  0x14   :  { %980 = vsyncadd [#allocation6], 4294966144 }
  0x15   :  { %981 = dma.done.wait [#allocation9], 6016  }
  0x16   :  { %982 = vsyncadd [#allocation9], 4294961280  ;;  %v160_v0 = vld [vmem:[#allocation8 + $0x28] sm:$0xff]  ;;  %v159_v2 = vld [vmem:[#allocation8 + $0x20] sm:$0xff]  ;;  %vm161_vm0 = vcmask 261120   ;;  %vm193_vm1 = vcmask 523264  }
  0x17   :  { %v192_v1 = vld [vmem:[#allocation8 + $0x68] sm:$0xff]  ;;  %177 = vmatpush.msra.mxu3 %v160_v0  ;;  %v191_v3 = vld [vmem:[#allocation8 + $0x60] sm:$0xff]  ;;  %v158_v4 = vld [vmem:[#allocation8 + $0x18] sm:$0xff]  ;;  %vm351_vm2 = vcmask 1041409   ;;  %vm353_vm3 = vcmask 1042434   ;;  %vm355_vm4 = vcmask 1043459  }
  0x18   :  { %226 = vmatpush.msra.mxu1 %v192_v1  ;;  %768 = vmatpush.msra.mxu2 %v192_v1  ;;  %v190_v5 = vld [vmem:[#allocation8 + $0x58] sm:$0xff]  ;;  %v157_v6 = vld [vmem:[#allocation8 + $0x10] sm:$0xff]  ;;  %v188_v9 = vld [vmem:[#allocation8 + $0x48] sm:$0xff]  ;;  %vm357_vm5 = vcmask 1044484   ;;  %vm359_vm6 = vcmask 1045509   ;;  %vm361_vm7 = vcmask 1046534  }
  0x19   :  { %178 = vmatpush.msra.mxu3 %v159_v2  ;;  %v189_v7 = vld [vmem:[#allocation8 + $0x50] sm:$0xff]  ;;  %v94_v8 = vld [vmem:[#allocation5] sm:$0xff]  ;;  %v187_v10 = vld [vmem:[#allocation8 + $0x40] sm:$0xff]  ;;  %vm363_vm8 = vcmask 1047559   ;;  %vm366_vm9 = vcmask 64512   ;;  %vm107_vm10 = vcmask 130048  }
  0x1a   :  { %227 = vmatpush.msra.mxu1 %v191_v3  ;;  %769 = vmatpush.msra.mxu2 %v191_v3  ;;  %v186_v11 = vld [vmem:[#allocation8 + $0x38] sm:$0xff]  ;;  %v185_v12 = vld [vmem:[#allocation8 + $0x30] sm:$0xff]  ;;  %v1043_v13 = vld [vmem:[#allocation7] sm:$0xff]  ;;  %s993_s2 = smov 32   ;;  %s994_s4 = smov 64   ;;  %vm624_vm14 = vcmask 785408  }
  0x1b   :  { %179 = vmatpush.msra.mxu3 %v158_v4  ;;  %v1045_v14 = vld [vmem:[#allocation7 + $0x20] sm:$0xff]  ;;  %v1051_v15 = vld [vmem:[#allocation7 + $0x8] sm:$0xff]  ;;  %v1059_v17 = vld [vmem:[#allocation7 + $0x10] sm:$0xff]  ;;  %s995_s17 = smov 96   ;;  %s996_s18 = smov [#allocation11]  }
  0x1c   :  { %228 = vmatpush.msra.mxu1 %v190_v5  ;;  %770 = vmatpush.msra.mxu2 %v190_v5  ;;  %v1053_v16 = vld [vmem:[#allocation7 + $0x28] sm:$0xff]  ;;  %v1061_v18 = vld [vmem:[#allocation7 + $0x30] sm:$0xff]  ;;  %v1067_v19 = vld [vmem:[#allocation7 + $0x18] sm:$0xff]  ;;  %s742_s19 = sshll.u32 %s996_s18, 4  ;;  %s744_s22 = sshll.u32 %s1173_s5, 4  ;;  %s743_s19 = int_to_ptr.vmem [resolvable:$true] %s742_s19  ;;  %s745_s22 = int_to_ptr.hbm [resolvable:$true] %s744_s22 }
  0x1d   :  { %180 = vmatpush.msra.mxu3 %v157_v6  ;;  %v1069_v20 = vld [vmem:[#allocation7 + $0x38] sm:$0xff]  ;;  %v1075_v21 = vld [vmem:[#allocation10] sm:$0xff] }
  0x1e   :  { %229 = vmatpush.msra.mxu1 %v189_v7  ;;  %771 = vmatpush.msra.mxu2 %v189_v7  ;;  %v291_v24 = vperm.slane %v1075_v21, 3  ;;  %v308_v36 = vperm.slane %v1075_v21, 4 }
  0x1f   :  { %757 = vmatmul.msk.f32.vlgmr.msra.gmra.mxu3 %vm161_vm0, %v94_v8 }
  0x20   :  { %230 = vmatpush.msra.mxu1 %v188_v9  ;;  %772 = vmatpush.msra.mxu2 %v188_v9 }
  0x22   :  { %231 = vmatpush.msra.mxu1 %v187_v10  ;;  %773 = vmatpush.msra.mxu2 %v187_v10 }
  0x24   :  { %232 = vmatpush.msra.mxu1 %v186_v11  ;;  %774 = vmatpush.msra.mxu2 %v186_v11 }
  0x26   :  { %233 = vmatpush.msra.mxu1 %v185_v12  ;;  %775 = vmatpush.msra.mxu2 %v185_v12 }
  0x27   :  { %758 = vmatmul.msk.f32.vlgmr.msra.gmra.mxu1 %vm193_vm1, %v1043_v13  ;;  %762 = vmatmul.msk.f32.vlgmr.msra.gmra.mxu2 %vm193_vm1, %v1045_v14 }
  0x2f   :  { %759 = vmatmul.msk.f32.gmra.mxu1 %vm193_vm1, %v1051_v15  ;;  %763 = vmatmul.msk.f32.gmra.mxu2 %vm193_vm1, %v1053_v16 }
  0x37   :  { %760 = vmatmul.msk.f32.gmra.mxu1 %vm193_vm1, %v1059_v17  ;;  %764 = vmatmul.msk.f32.gmra.mxu2 %vm193_vm1, %v1061_v18 }
  0x3f   :  { %761 = vmatmul.msk.f32.gmra.mxu1 %vm193_vm1, %v1067_v19  ;;  %765 = vmatmul.msk.f32.gmra.mxu2 %vm193_vm1, %v1069_v20 }
  0xa2   :  { %v182_v22 = vpop.f32.mrf.mxu3 }
  0xa3   :  { %v267_v23 = vperm.slane %v182_v22, 0  ;;  %v263_v26 = vrot.slane %v182_v22, 4  ;;  %v260_v28 = vrot.slane %v182_v22, 1  ;;  %v264_v35 = vrot.slane %v182_v22, 5 }
  0xa4   :  { %v235_v25 = vpop.f32.mrf.mxu1  ;;  %v261_v38 = vrot.slane %v182_v22, 2  ;;  %v265_v51 = vrot.slane %v182_v22, 6  ;;  %v262_v55 = vrot.slane %v182_v22, 3  ;;  %v266_v1 = vrot.slane %v182_v22, 7 }
  0xa5   :  { %v283_v27 = vadd.f32 %v267_v23, %v235_v25  ;;  %v271_v30 = vperm.slane %v263_v26, 0  ;;  %v268_v31 = vperm.slane %v260_v28, 0  ;;  %v272_v42 = vperm.slane %v264_v35, 0 }
  0xa6   :  { %v269_v44 = vperm.slane %v261_v38, 0  ;;  %v273_v57 = vperm.slane %v265_v51, 0  ;;  %v270_v59 = vperm.slane %v262_v55, 0  ;;  %v274_v6 = vperm.slane %v266_v1, 0 }
  0xa7   :  { %v292_v29 = vadd.f32 %v291_v24, %v283_v27  ;;  %v341_v27 = vlaneseq  ;;  %v992_v51 = vmov 0  }
  0xa8   :  { %790 = vset.pattern.permute.xlu2 %v992_v51  ;;  %789 = vset.pattern.permute.xlu1 %v992_v51 }
  0xa9   :  { %791 = vtanh.f32 %v292_v29  ;;  %788 = vset.pattern.permute.xlu0 %v992_v51 }
  0xaa   :  { %v247_v32 = vpop.f32.mrf.mxu2 }
  0xab   :  { %v287_v33 = vadd.f32 %v271_v30, %v247_v32 }
  0xac   :  { %v238_v34 = vpop.f32.mrf.mxu1 }
  0xad   :  { %v284_v37 = vadd.f32 %v268_v31, %v238_v34  ;;  %v296_v39 = vadd.f32 %v291_v24, %v287_v33  ;;  %v1079_v31 = vand.u32 127, %v341_v27 }
  0xaf   :  { %v792_v40 = vpop.eup %791  ;;  %v293_v41 = vadd.f32 %v291_v24, %v284_v37  ;;  %793 = vtanh.f32 %v296_v39 }
  0xb0   :  { %v309_v43 = vmul.f32 %v792_v40, %v308_v36 }
  0xb1   :  { %795 = vtanh.f32 %v293_v41 }
  0xb2   :  { %317 = vadd.xlane.f32.xlu0 %v309_v43  ;;  %v250_v45 = vpop.f32.mrf.mxu2 }
  0xb3   :  { %v288_v46 = vadd.f32 %v272_v42, %v250_v45 }
  0xb4   :  { %v241_v47 = vpop.f32.mrf.mxu1 }
  0xb5   :  { %v285_v48 = vadd.f32 %v269_v44, %v241_v47  ;;  %v794_v49 = vpop.eup %793  ;;  %v297_v50 = vadd.f32 %v291_v24, %v288_v46 }
  0xb6   :  { %v313_v54 = vmul.f32 %v794_v49, %v308_v36 }
  0xb7   :  { %v796_v52 = vpop.eup %795  ;;  %v294_v53 = vadd.f32 %v291_v24, %v285_v48  ;;  %797 = vtanh.f32 %v297_v50 }
  0xb8   :  { %v310_v56 = vmul.f32 %v796_v52, %v308_v36  ;;  %325 = vadd.xlane.f32.xlu2 %v313_v54 }
  0xb9   :  { %799 = vtanh.f32 %v294_v53 }
  0xba   :  { %319 = vadd.xlane.f32.xlu0 %v310_v56  ;;  %v253_v58 = vpop.f32.mrf.mxu2 }
  0xbb   :  { %v289_v60 = vadd.f32 %v273_v57, %v253_v58 }
  0xbc   :  { %v244_v61 = vpop.f32.mrf.mxu1 }
  0xbd   :  { %v286_v62 = vadd.f32 %v270_v59, %v244_v61  ;;  %v798_v63 = vpop.eup %797  ;;  %v298_v0 = vadd.f32 %v291_v24, %v289_v60 }
  0xbe   :  { %v314_v4 = vmul.f32 %v798_v63, %v308_v36 }
  0xbf   :  { %v800_v2 = vpop.eup %799  ;;  %v295_v3 = vadd.f32 %v291_v24, %v286_v62  ;;  %801 = vtanh.f32 %v298_v0 }
  0xc0   :  { %v311_v5 = vmul.f32 %v800_v2, %v308_v36  ;;  %327 = vadd.xlane.f32.xlu2 %v314_v4 }
  0xc1   :  { %803 = vtanh.f32 %v295_v3 }
  0xc2   :  { %321 = vadd.xlane.f32.xlu1 %v311_v5  ;;  %v256_v7 = vpop.f32.mrf.mxu2 }
  0xc3   :  { %v290_v8 = vadd.f32 %v274_v6, %v256_v7 }
  0xc5   :  { %v802_v9 = vpop.eup %801  ;;  %v299_v10 = vadd.f32 %v291_v24, %v290_v8 }
  0xc6   :  { %v315_v12 = vmul.f32 %v802_v9, %v308_v36 }
  0xc7   :  { %v804_v11 = vpop.eup %803  ;;  %805 = vtanh.f32 %v299_v10 }
  0xc8   :  { %v312_v23 = vmul.f32 %v804_v11, %v308_v36  ;;  %329 = vadd.xlane.f32.xlu0 %v315_v12 }
  0xca   :  { %323 = vadd.xlane.f32.xlu1 %v312_v23 }
  0xcd   :  { %v806_v22 = vpop.eup %805 }
  0xce   :  { %v316_v25 = vmul.f32 %v806_v22, %v308_v36 }
  0xd2   :  { %331 = vadd.xlane.f32.xlu1 %v316_v25 }
 0x125   :  { %v318_v26 = vpop.xlane.xlu0 %317 }
 0x126   :  { %v343_v33 = vperm.slane %v318_v26, %v1079_v31 }
 0x12b   :  { %v326_v28 = vpop.xlane.xlu2 %325 }
 0x12c   :  { %v347_v37 = vperm.slane %v326_v28, %v1079_v31 }
 0x12d   :  { %v320_v30 = vpop.xlane.xlu0 %319 }
 0x12e   :  { %v344_v32 = vperm.slane %v320_v30, %v1079_v31 }
 0x130   :  { %v352_v35 = vsel %vm351_vm2, %v344_v32, %v343_v33  ;;  %v105_v32 = vld [vmem:[#allocation8 + $0x8] sm:$0xff]  ;;  %v93_v33 = vld [vmem:[#allocation2] sm:$0xff] }
 0x131   :  { %125 = vmatpush.msra.mxu0 %v105_v32 }
 0x133   :  { %v328_v38 = vpop.xlane.xlu2 %327 }
 0x134   :  { %v348_v42 = vperm.slane %v328_v38, %v1079_v31 }
 0x135   :  { %v322_v29 = vpop.xlane.xlu1 %321 }
 0x136   :  { %v345_v24 = vperm.slane %v322_v29, %v1079_v31 }
 0x138   :  { %v354_v39 = vsel %vm353_vm3, %v345_v24, %v352_v35  ;;  %v104_v24 = vld [vmem:[#allocation8] sm:$0xff] }
 0x139   :  { %126 = vmatpush.msra.mxu0 %v104_v24 }
 0x13a   :  { %756 = vmatmul.msk.f32.vlgmr.msra.gmra.mxu0 %vm107_vm10, %v93_v33 }
 0x13b   :  { %v330_v43 = vpop.xlane.xlu0 %329 }
 0x13c   :  { %v349_v45 = vperm.slane %v330_v43, %v1079_v31 }
 0x13d   :  { %v324_v34 = vpop.xlane.xlu1 %323 }
 0x13e   :  { %v346_v36 = vperm.slane %v324_v34, %v1079_v31 }
 0x140   :  { %v356_v40 = vsel %vm355_vm4, %v346_v36, %v354_v39 }
 0x141   :  { %v358_v41 = vsel %vm357_vm5, %v347_v37, %v356_v40 }
 0x142   :  { %v360_v44 = vsel %vm359_vm6, %v348_v42, %v358_v41 }
 0x143   :  { %v362_v48 = vsel %vm361_vm7, %v349_v45, %v360_v44 }
 0x145   :  { %v332_v46 = vpop.xlane.xlu1 %331 }
 0x146   :  { %v350_v47 = vperm.slane %v332_v46, %v1079_v31 }
 0x148   :  { %v364_v49 = vsel %vm363_vm8, %v350_v47, %v362_v48 }
 0x149   :  { %v367_v50 = vsel %vm366_vm9, %v364_v49, -inf }
 0x14a   :  { %368 = vmax.xlane.f32.xlu2 %v367_v50 }
 0x1bd   :  { %v369_v52 = vpop.xlane.xlu2 %368 }
 0x1be   :  { %v373_v53 = vperm.slane %v369_v52, 2  ;;  %v372_v54 = vperm.slane %v369_v52, 1  ;;  %v371_v55 = vperm.slane %v369_v52, 0  ;;  %v374_v59 = vperm.slane %v369_v52, 3 }
 0x1bf   :  { %v375_v60 = vperm.slane %v369_v52, 4  ;;  %v378_v61 = vperm.slane %v369_v52, 7  ;;  %v376_v5 = vperm.slane %v369_v52, 5  ;;  %v377_v7 = vperm.slane %v369_v52, 6 }
 0x1c0   :  { %v389_v56 = vsub.f32 %v322_v29, %v373_v53  ;;  %v388_v57 = vsub.f32 %v320_v30, %v372_v54  ;;  %v387_v58 = vsub.f32 %v318_v26, %v371_v55  ;;  %v390_v1 = vsub.f32 %v324_v34, %v374_v59 }
 0x1c1   :  { %v391_v2 = vsub.f32 %v326_v28, %v375_v60  ;;  %v394_v3 = vsub.f32 %v332_v46, %v378_v61  ;;  %v392_v12 = vsub.f32 %v328_v38, %v376_v5  ;;  %v393_v23 = vsub.f32 %v330_v43, %v377_v7 }
 0x1c2   :  { %v399_v62 = vmul.f32 1.442695, %v389_v56  ;;  %v397_v63 = vmul.f32 1.442695, %v388_v57  ;;  %v395_v0 = vmul.f32 1.442695, %v387_v58 }
 0x1c3   :  { %v401_v4 = vmul.f32 1.442695, %v390_v1  ;;  %v403_v6 = vmul.f32 1.442695, %v391_v2  ;;  %v409_v9 = vmul.f32 1.442695, %v394_v3 }
 0x1c4   :  { %807 = vpow2.f32 %v399_v62  ;;  %v405_v22 = vmul.f32 1.442695, %v392_v12  ;;  %v407_v25 = vmul.f32 1.442695, %v393_v23  ;;  %v106_v12 = vperm.slane %v1075_v21, 0  ;;  %v128_v23 = vpop.f32.mrf.mxu0 }
 0x1c5   :  { %809 = vpow2.f32 %v397_v63 }
 0x1c6   :  { %811 = vpow2.f32 %v395_v0 }
 0x1c7   :  { %813 = vpow2.f32 %v401_v4 }
 0x1c8   :  { %815 = vpow2.f32 %v403_v6 }
 0x1c9   :  { %817 = vpow2.f32 %v409_v9 }
 0x1ca   :  { %v1097_v8 = vpop.eup %807  ;;  %819 = vpow2.f32 %v405_v22  ;;  %v1122_v22 = vadd.f32 %v128_v23, %v106_v12 }
 0x1cb   :  { %v810_v10 = vpop.eup %809  ;;  %426 = vperm.xlu2 %790, %v1097_v8   ;;  %821 = vpow2.f32 %v407_v25 }
 0x1cc   :  { %v812_v11 = vpop.eup %811  ;;  %423 = vperm.xlu1 %789, %v810_v10  }
 0x1cd   :  { %420 = vperm.xlu0 %788, %v812_v11   ;;  %v814_v26 = vpop.eup %813 }
 0x1ce   :  { %v816_v27 = vpop.eup %815 }
 0x1cf   :  { %v1100_v28 = vpop.eup %817 }
 0x1d0   :  { %v820_v29 = vpop.eup %819 }
 0x1d1   :  { %v822_v30 = vpop.eup %821 }
 0x1d3   :  { %429 = vperm.xlu2 %790, %v814_v26  }
 0x1d4   :  { %432 = vperm.xlu1 %789, %v816_v27  }
 0x1d5   :  { %441 = vperm.xlu0 %788, %v1100_v28  }
 0x1db   :  { %435 = vperm.xlu2 %790, %v820_v29  }
 0x1dc   :  { %438 = vperm.xlu1 %789, %v822_v30  }
 0x225   :  { %v427_v34 = vpop.permute.xlu2 %426 }
 0x226   :  { %v445_v42 = vperm.slane %v427_v34, %v1079_v31 }
 0x22d   :  { %v430_v37 = vpop.permute.xlu2 %429 }
 0x22e   :  { %v446_v45 = vperm.slane %v430_v37, %v1079_v31 }
 0x235   :  { %v436_v46 = vpop.permute.xlu2 %435 }
 0x236   :  { %v448_v50 = vperm.slane %v436_v46, %v1079_v31 }
 0x23e   :  { %v424_v35 = vpop.permute.xlu1 %423 }
 0x23f   :  { %v421_v36 = vpop.permute.xlu0 %420  ;;  %v444_v38 = vperm.slane %v424_v35, %v1079_v31 }
 0x240   :  { %v443_v39 = vperm.slane %v421_v36, %v1079_v31 }
 0x242   :  { %v451_v40 = vsel %vm351_vm2, %v444_v38, %v443_v39 }
 0x243   :  { %v452_v43 = vsel %vm353_vm3, %v445_v42, %v451_v40 }
 0x244   :  { %v453_v47 = vsel %vm355_vm4, %v446_v45, %v452_v43 }
 0x246   :  { %v433_v41 = vpop.permute.xlu1 %432 }
 0x247   :  { %v447_v44 = vperm.slane %v433_v41, %v1079_v31  ;;  %v442_v49 = vpop.permute.xlu0 %441 }
 0x248   :  { %v450_v53 = vperm.slane %v442_v49, %v1079_v31 }
 0x249   :  { %v454_v48 = vsel %vm357_vm5, %v447_v44, %v453_v47 }
 0x24a   :  { %v455_v54 = vsel %vm359_vm6, %v448_v50, %v454_v48 }
 0x24e   :  { %v439_v51 = vpop.permute.xlu1 %438 }
 0x24f   :  { %v449_v52 = vperm.slane %v439_v51, %v1079_v31 }
 0x251   :  { %v456_v55 = vsel %vm361_vm7, %v449_v52, %v455_v54 }
 0x252   :  { %v457_v56 = vsel %vm363_vm8, %v450_v53, %v456_v55 }
 0x253   :  { %v459_v57 = vsel %vm366_vm9, %v457_v56, 0.0 }
 0x254   :  { %460 = vadd.xlane.f32.xlu2 %v459_v57 }
 0x2c7   :  { %v461_v58 = vpop.xlane.xlu2 %460 }
 0x2c8   :  { %823 = vrcp.f32 %v461_v58 }
 0x2ce   :  { %v824_v59 = vpop.eup %823 }
 0x2cf   :  { %v465_v60 = vperm.slane %v824_v59, 1  ;;  %v464_v61 = vperm.slane %v824_v59, 0  ;;  %v467_v0 = vperm.slane %v824_v59, 3  ;;  %v466_v31 = vperm.slane %v824_v59, 2 }
 0x2d0   :  { %v469_v3 = vperm.slane %v824_v59, 5  ;;  %v468_v4 = vperm.slane %v824_v59, 4  ;;  %v471_v7 = vperm.slane %v824_v59, 7  ;;  %v470_v9 = vperm.slane %v824_v59, 6 }
 0x2d1   :  { %v481_v62 = vmul.f32 %v810_v10, %v465_v60  ;;  %v480_v63 = vmul.f32 %v812_v11, %v464_v61  ;;  %v483_v1 = vmul.f32 %v814_v26, %v467_v0  ;;  %v482_v2 = vmul.f32 %v1097_v8, %v466_v31 }
 0x2d2   :  { %v485_v5 = vmul.f32 %v820_v29, %v469_v3  ;;  %v484_v6 = vmul.f32 %v816_v27, %v468_v4  ;;  %v487_v10 = vmul.f32 %v1100_v28, %v471_v7  ;;  %v486_v11 = vmul.f32 %v822_v30, %v470_v9 }
 0x2d3   :  { %495 = vperm.xlu0 %788, %v481_v62   ;;  %490 = vperm.xlu1 %789, %v480_v63   ;;  %v134_v8 = vmul.f32 %v1122_v22, %v1122_v22 }
 0x2db   :  { %505 = vperm.xlu0 %788, %v483_v1   ;;  %500 = vperm.xlu1 %789, %v482_v2  }
 0x2e3   :  { %515 = vperm.xlu0 %788, %v485_v5   ;;  %510 = vperm.xlu1 %789, %v484_v6  }
 0x2eb   :  { %525 = vperm.xlu0 %788, %v487_v10   ;;  %520 = vperm.xlu1 %789, %v486_v11  }
 0x315   :  { %131 = vadd.xlane.f32.xlu1 %v1122_v22  ;;  %135 = vadd.xlane.f32.xlu0 %v134_v8 }
 0x345   :  { %v496_v25 = vpop.permute.xlu0 %495  ;;  %v491_v26 = vpop.permute.xlu1 %490 }
 0x346   :  { %v529_v27 = vmul.f32 %v496_v25, %v1051_v15  ;;  %v528_v28 = vmul.f32 %v491_v26, %v1043_v13 }
 0x348   :  { %v543_v29 = vsel %vm193_vm1, %v529_v27, 0.0  ;;  %v536_v30 = vsel %vm193_vm1, %v528_v28, 0.0 }
 0x349   :  { %v544_v32 = vrot.slane %v543_v29, 4  ;;  %v537_v24 = vrot.slane %v536_v30, 4 }
 0x34b   :  { %v545_v37 = vadd.f32 %v544_v32, %v543_v29  ;;  %v538_v38 = vadd.f32 %v537_v24, %v536_v30 }
 0x34d   :  { %v506_v33 = vpop.permute.xlu0 %505  ;;  %v501_v34 = vpop.permute.xlu1 %500  ;;  %v546_v41 = vrot.slane %v545_v37, 2  ;;  %v539_v42 = vrot.slane %v538_v38, 2 }
 0x34e   :  { %v531_v35 = vmul.f32 %v506_v33, %v1067_v19  ;;  %v530_v36 = vmul.f32 %v501_v34, %v1059_v17 }
 0x34f   :  { %v547_v17 = vadd.f32 %v546_v41, %v545_v37  ;;  %v540_v49 = vadd.f32 %v539_v42, %v538_v38  ;;  %v621_v41 = vld [vmem:[#allocation8 + $0xc0] sm:$0xff]  ;;  %v620_v42 = vld [vmem:[#allocation8 + $0xb8] sm:$0xff] }
 0x350   :  { %v557_v39 = vsel %vm193_vm1, %v531_v35, 0.0  ;;  %v550_v15 = vsel %vm193_vm1, %v530_v36, 0.0 }
 0x351   :  { %v558_v40 = vrot.slane %v557_v39, 4  ;;  %v551_v13 = vrot.slane %v550_v15, 4  ;;  %v548_v56 = vrot.slane %v547_v17, 1  ;;  %v541_v57 = vrot.slane %v540_v49, 1 }
 0x353   :  { %v552_v43 = vadd.f32 %v551_v13, %v550_v15  ;;  %v559_v44 = vadd.f32 %v558_v40, %v557_v39  ;;  %v549_v1 = vadd.f32 %v548_v56, %v547_v17  ;;  %v542_v2 = vadd.f32 %v541_v57, %v540_v49  ;;  %v622_v13 = vld [vmem:[#allocation8 + $0xc8] sm:$0xff] }
 0x354   :  { %632 = vmatpush.msrb.mxu3 %v622_v13  ;;  %v614_v17 = vld [vmem:[#allocation8 + $0x88] sm:$0xff]  ;;  %v704_v13 = vld [vmem:[#allocation8 + $0x138] sm:$0xff] }
 0x355   :  { %v553_v45 = vrot.slane %v552_v43, 2  ;;  %v516_v46 = vpop.permute.xlu0 %515  ;;  %v511_v47 = vpop.permute.xlu1 %510  ;;  %v560_v50 = vrot.slane %v559_v44, 2  ;;  %v600_v25 = vsel %vm351_vm2, %v549_v1, %v542_v2  ;;  %v155_v2 = vperm.slane %v1075_v21, 2 }
 0x356   :  { %v533_v48 = vmul.f32 %v516_v46, %v1053_v16  ;;  %v532_v19 = vmul.f32 %v511_v47, %v1045_v14  ;;  %633 = vmatpush.msrb.mxu3 %v621_v41  ;;  %v616_v46 = vld [vmem:[#allocation8 + $0x98] sm:$0xff]  ;;  %v703_v41 = vld [vmem:[#allocation8 + $0x130] sm:$0xff] }
 0x357   :  { %v554_v53 = vadd.f32 %v553_v45, %v552_v43  ;;  %v561_v60 = vadd.f32 %v560_v50, %v559_v44  ;;  %v619_v43 = vld [vmem:[#allocation8 + $0xb0] sm:$0xff]  ;;  %v618_v44 = vld [vmem:[#allocation8 + $0xa8] sm:$0xff]  ;;  %v617_v45 = vld [vmem:[#allocation8 + $0xa0] sm:$0xff] }
 0x358   :  { %v571_v51 = vsel %vm193_vm1, %v533_v48, 0.0  ;;  %v564_v52 = vsel %vm193_vm1, %v532_v19, 0.0  ;;  %634 = vmatpush.msrb.mxu3 %v620_v42  ;;  %v615_v48 = vld [vmem:[#allocation8 + $0x90] sm:$0xff]  ;;  %v613_v50 = vld [vmem:[#allocation8 + $0x80] sm:$0xff]  ;;  %v702_v42 = vld [vmem:[#allocation8 + $0x128] sm:$0xff] }
 0x359   :  { %v572_v54 = vrot.slane %v571_v51, 4  ;;  %v565_v55 = vrot.slane %v564_v52, 4  ;;  %v555_v61 = vrot.slane %v554_v53, 1  ;;  %v562_v4 = vrot.slane %v561_v60, 1 }
 0x35a   :  { %635 = vmatpush.msrb.mxu3 %v619_v43  ;;  %v701_v43 = vld [vmem:[#allocation8 + $0x120] sm:$0xff] }
 0x35b   :  { %v573_v58 = vadd.f32 %v572_v54, %v571_v51  ;;  %v566_v59 = vadd.f32 %v565_v55, %v564_v52  ;;  %v556_v9 = vadd.f32 %v555_v61, %v554_v53  ;;  %v612_v53 = vld [vmem:[#allocation8 + $0x78] sm:$0xff] }
 0x35c   :  { %636 = vmatpush.msrb.mxu3 %v618_v44  ;;  %v700_v44 = vld [vmem:[#allocation8 + $0x118] sm:$0xff] }
 0x35d   :  { %v574_v62 = vrot.slane %v573_v58, 2  ;;  %v567_v16 = vrot.slane %v566_v59, 2  ;;  %v526_v63 = vpop.permute.xlu0 %525  ;;  %v521_v14 = vpop.permute.xlu1 %520 }
 0x35e   :  { %v535_v0 = vmul.f32 %v526_v63, %v1069_v20  ;;  %v534_v31 = vmul.f32 %v521_v14, %v1061_v18  ;;  %v563_v20 = vadd.f32 %v562_v4, %v561_v60  ;;  %v601_v18 = vsel %vm353_vm3, %v556_v9, %v600_v25  ;;  %637 = vmatpush.msrb.mxu3 %v617_v45 }
 0x35f   :  { %v568_v3 = vadd.f32 %v567_v16, %v566_v59  ;;  %v575_v5 = vadd.f32 %v574_v62, %v573_v58  ;;  %v611_v58 = vld [vmem:[#allocation8 + $0x70] sm:$0xff]  ;;  %v648_v59 = vperm.slane %v1075_v21, 6 }
 0x360   :  { %v585_v6 = vsel %vm193_vm1, %v535_v0, 0.0  ;;  %v578_v7 = vsel %vm193_vm1, %v534_v31, 0.0  ;;  %v602_v33 = vsel %vm355_vm4, %v563_v20, %v601_v18  ;;  %638 = vmatpush.msrb.mxu3 %v616_v46  ;;  %v153_v31 = vperm.slane %v1075_v21, 1  ;;  %v699_v46 = vld [vmem:[#allocation8 + $0x110] sm:$0xff] }
 0x361   :  { %v569_v10 = vrot.slane %v568_v3, 1  ;;  %v586_v11 = vrot.slane %v585_v6, 4  ;;  %v579_v12 = vrot.slane %v578_v7, 4  ;;  %v576_v26 = vrot.slane %v575_v5, 1 }
 0x362   :  { %639 = vmatpush.msrb.mxu3 %v615_v48 }
 0x363   :  { %v587_v23 = vadd.f32 %v586_v11, %v585_v6  ;;  %v580_v8 = vadd.f32 %v579_v12, %v578_v7  ;;  %v570_v27 = vadd.f32 %v569_v10, %v568_v3  ;;  %v577_v24 = vadd.f32 %v576_v26, %v575_v5 }
 0x364   :  { %640 = vmatpush.msrb.mxu3 %v614_v17  ;;  %v623_v6 = vperm.slane %v1075_v21, 5  ;;  %v697_v17 = vld [vmem:[#allocation8 + $0x100] sm:$0xff] }
 0x365   :  { %v588_v28 = vrot.slane %v587_v23, 2  ;;  %v581_v29 = vrot.slane %v580_v8, 2  ;;  %v603_v36 = vsel %vm357_vm5, %v570_v27, %v602_v33 }
 0x366   :  { %v604_v39 = vsel %vm359_vm6, %v577_v24, %v603_v36  ;;  %641 = vmatpush.msrb.mxu3 %v613_v50  ;;  %v710_v36 = vld [vmem:[#allocation8 + $0x168] sm:$0xff]  ;;  %v695_v50 = vld [vmem:[#allocation8 + $0xf0] sm:$0xff] }
 0x367   :  { %v589_v30 = vadd.f32 %v588_v28, %v587_v23  ;;  %v582_v32 = vadd.f32 %v581_v29, %v580_v8  ;;  %712 = vmatpush.msrb.mxu0 %v710_v36 }
 0x368   :  { %642 = vmatpush.msrb.mxu3 %v612_v53 }
 0x369   :  { %v590_v34 = vrot.slane %v589_v30, 1  ;;  %v583_v35 = vrot.slane %v582_v32, 1 }
 0x36a   :  { %643 = vmatpush.msrb.mxu3 %v611_v58 }
 0x36b   :  { %v584_v37 = vadd.f32 %v583_v35, %v582_v32  ;;  %v591_v38 = vadd.f32 %v590_v34, %v589_v30 }
 0x36d   :  { %v605_v15 = vsel %vm361_vm7, %v584_v37, %v604_v39  ;;  %v709_v37 = vld [vmem:[#allocation8 + $0x160] sm:$0xff]  ;;  %v707_v39 = vld [vmem:[#allocation8 + $0x150] sm:$0xff] }
 0x36e   :  { %v606_v40 = vsel %vm363_vm8, %v591_v38, %v605_v15  ;;  %v708_v38 = vld [vmem:[#allocation8 + $0x158] sm:$0xff]  ;;  %713 = vmatpush.msrb.mxu0 %v709_v37  ;;  %v706_v15 = vld [vmem:[#allocation8 + $0x148] sm:$0xff] }
 0x36f   :  { %607 = vrot.lane.b32.xlu2 %v606_v40, %s993_s2  ;;  %v705_v40 = vld [vmem:[#allocation8 + $0x140] sm:$0xff] }
 0x370   :  { %714 = vmatpush.msrb.mxu0 %v708_v38 }
 0x372   :  { %715 = vmatpush.msrb.mxu0 %v707_v39 }
 0x374   :  { %716 = vmatpush.msrb.mxu0 %v706_v15 }
 0x376   :  { %717 = vmatpush.msrb.mxu0 %v705_v40 }
 0x377   :  { %670 = vrot.lane.b32.xlu2 %v648_v59, %s994_s4 }
 0x378   :  { %718 = vmatpush.msrb.mxu0 %v704_v13 }
 0x37a   :  { %719 = vmatpush.msrb.mxu0 %v703_v41 }
 0x37c   :  { %720 = vmatpush.msrb.mxu0 %v702_v42 }
 0x37e   :  { %721 = vmatpush.msrb.mxu0 %v701_v43 }
 0x380   :  { %722 = vmatpush.msrb.mxu0 %v700_v44 }
 0x382   :  { %723 = vmatpush.msrb.mxu0 %v699_v46 }
 0x388   :  { %v132_v47 = vpop.xlane.xlu1 %131  ;;  %v136_v49 = vpop.xlane.xlu0 %135 }
 0x389   :  { %v133_v19 = vmul.f32 0.03125, %v132_v47  ;;  %v137_v52 = vmul.f32 0.03125, %v136_v49  ;;  %v696_v49 = vld [vmem:[#allocation8 + $0xf8] sm:$0xff] }
 0x38b   :  { %v138_v51 = vmul.f32 %v133_v19, %v133_v19  ;;  %v140_v14 = vsub.f32 %v1122_v22, %v133_v19  ;;  %v698_v19 = vld [vmem:[#allocation8 + $0x108] sm:$0xff] }
 0x38c   :  { %724 = vmatpush.msrb.mxu0 %v698_v19 }
 0x38d   :  { %v139_v54 = vsub.f32 %v137_v52, %v138_v51 }
 0x38e   :  { %725 = vmatpush.msrb.mxu0 %v697_v17 }
 0x38f   :  { %v141_v55 = vadd.f32 1e-05, %v139_v54  ;;  %v711_v54 = vperm.slane %v1075_v21, 7 }
 0x390   :  { %726 = vmatpush.msrb.mxu0 %v696_v49 }
 0x391   :  { %825 = vrsqrt.f32 %v141_v55  ;;  %vm148_vm11 = vweird.f32 %v141_v55 }
 0x392   :  { %727 = vmatpush.msrb.mxu0 %v695_v50 }
 0x397   :  { %v826_v56 = vpop.eup %825 }
 0x398   :  { %v143_v57 = vmul.f32 %v826_v56, %v141_v55  ;;  %vm149_vm12 = vweird.f32 %v826_v56 }
 0x399   :  { %vm150_vm13 = vmor %vm148_vm11, %vm149_vm12 }
 0x39a   :  { %v144_v60 = vmul.f32 %v826_v56, %v143_v57 }
 0x39c   :  { %v145_v61 = vmul.f32 0.5, %v144_v60 }
 0x39e   :  { %v146_v62 = vsub.f32 1.5, %v145_v61 }
 0x3a0   :  { %v147_v16 = vmul.f32 %v826_v56, %v146_v62 }
 0x3a2   :  { %v151_v63 = vsel %vm150_vm13, %v826_v56, %v147_v16 }
 0x3a3   :  { %v152_v0 = vmul.f32 %v151_v63, %v140_v14 }
 0x3a5   :  { %v154_v1 = vmul.f32 %v153_v31, %v152_v0 }
 0x3a7   :  { %v156_v3 = vadd.f32 %v155_v2, %v154_v1 }
 0x3c9   :  { %v608_v4 = vpop.permute.xlu2 %607 }
 0x3ca   :  { %v610_v5 = vsel %vm161_vm0, %v156_v3, %v608_v4 }
 0x3cb   :  { %691 = vrot.lane.b32.xlu0 %v610_v5, %s993_s2  ;;  %766 = vmatmul.msk.f32.vlgmr.msrb.gmra.mxu3 %vm624_vm14, %v610_v5 }
 0x3d1   :  { %v671_v28 = vpop.permute.xlu2 %670 }
 0x43d   :  { %v692_v51 = vpop.permute.xlu0 %691 }
 0x44e   :  { %v645_v7 = vpop.f32.mrf.mxu3 }
 0x44f   :  { %v646_v9 = vadd.f32 %v645_v7, %v623_v6 }
 0x451   :  { %v649_v22 = vadd.f32 %v648_v59, %v646_v9 }
 0x453   :  { %v767_v10 = vmul.f32 -1.442695, %v649_v22 }
 0x455   :  { %827 = vpow2.f32 %v767_v10 }
 0x45b   :  { %v828_v11 = vpop.eup %827 }
 0x45c   :  { %v653_v12 = vadd.f32 1.0, %v828_v11 }
 0x45e   :  { %829 = vrcp.f32 %v653_v12  ;;  %v665_v20 = vand.u32 2147483648, %v653_v12  ;;  %v663_v18 = vand.u32 2147483647, %v653_v12  ;;  %vm659_vm1 = vweird.f32 %v653_v12 }
 0x460   :  { %v666_v29 = vor.u32 1.1754944e-38, %v665_v20  ;;  %vm664_vm3 = vcmp.eq.f32.partialorder %v663_v18, 8.507059e+37 }
 0x464   :  { %v830_v23 = vpop.eup %829 }
 0x465   :  { %v655_v8 = vmul.f32 %v830_v23, %v653_v12  ;;  %vm660_vm15 = vweird.f32 %v830_v23 }
 0x466   :  { %vm661_vm2 = vmor %vm659_vm1, %vm660_vm15 }
 0x467   :  { %v656_v25 = vsub.f32 1.0, %v655_v8 }
 0x469   :  { %v657_v26 = vmul.f32 %v830_v23, %v656_v25 }
 0x46b   :  { %v658_v27 = vadd.f32 %v830_v23, %v657_v26 }
 0x46d   :  { %v662_v30 = vsel %vm661_vm2, %v830_v23, %v658_v27 }
 0x46e   :  { %v667_v32 = vsel %vm664_vm3, %v666_v29, %v662_v30 }
 0x46f   :  { %v673_v24 = vmul.f32 %v671_v28, %v667_v32  ;;  %v680_v45 = vsub.f32 1.0, %v667_v32 }
 0x471   :  { %675 = vrot.lane.b32.xlu2 %v673_v24, %s994_s4 }
 0x4cb   :  { %v676_v33 = vpop.permute.xlu2 %675 }
 0x4cc   :  { %v678_v34 = vadd.f32 %v676_v33, %v646_v9 }
 0x4ce   :  { %831 = vtanh.f32 %v678_v34 }
 0x4d4   :  { %v832_v35 = vpop.eup %831 }
 0x4d5   :  { %682 = vrot.lane.b32.xlu1 %v832_v35, %s995_s17 }
 0x547   :  { %v683_v47 = vpop.permute.xlu1 %682 }
 0x548   :  { %v685_v48 = vmul.f32 %v683_v47, %v680_v45 }
 0x54a   :  { %688 = vrot.lane.b32.xlu2 %v685_v48, %s995_s17 }
 0x552   :  { %732 = vrot.lane.b32.xlu2 %v685_v48, %s994_s4 }
 0x5a4   :  { %v689_v52 = vpop.permute.xlu2 %688 }
 0x5a5   :  { %v694_v53 = vsel %vm161_vm0, %v689_v52, %v692_v51 }
 0x5a6   :  { %728 = vmatmul.f32.vlgmr.msrb.gmra.mxu0 %v694_v53 }
 0x5ac   :  { %v733_v57 = vpop.permute.xlu2 %732 }
 0x623   :  { %v729_v55 = vpop.f32.mrf.mxu0 }
 0x624   :  { %v730_v56 = vadd.f32 %v729_v55, %v711_v54 }
 0x626   :  { %v735_v58 = vsel %vm624_vm14, %v730_v56, %v733_v57 }
 0x627   :  { %736 = vst [vmem:[#allocation11] sm:$0xff] %v735_v58 }
 0x628   :  { %747 = dma.vmem_to_hbm [thread:$0]  %s743_s19, 128, %s745_s22, [#allocation4]  }
 0x629   :  { %983 = dma.done.wait [#allocation4], 128  }
 0x62a   :  { %984 = vsyncadd [#allocation4], 4294967168 }
 0x62b   :  { %752 = vsyncpa [#allocation3], 1 }
 0x62c   :  { %753 = vsyncpa [#allocation6], 1 }
 0x62d   :  { %754 = vsyncpa [#allocation9], 1 }
 0x62e   :  { %755 = vsyncpa [#allocation4], 1 }

</bundles_post_ra>
